<compile_context>
chip_gen: v5e
topology: v5e:2x2
jax: 0.10.0
libtpu: 0.0.40
codegen_flags: <defaults>
</compile_context>

<pallas_src>
import jax
import jax.numpy as jnp
from jax.experimental import pallas as pl
from jax.experimental.pallas import tpu as pltpu

IN_FEATURES = 4
OUT_FEATURES = 4
LANES = 128
GROUPS = LANES // IN_FEATURES      # 32 batch rows packed per 128-lane vector


def linear_kernel(x_ref, w_ref, b_ref, o_ref):
    """o = x @ W_blockdiag + bias_tiled  on one (rt, 128) tile (MXU + VPU add)."""
    o_ref[...] = (
        jnp.dot(x_ref[...], w_ref[...], preferred_element_type=jnp.float32)
        + b_ref[...]
    ).astype(o_ref.dtype)


def linear_pallas(x, weight, bias, *, block_rows=2048):
    """x: (B, 4) f32; weight: (4, 4) f32 (torch (out,in) layout); bias: (4,) f32.

    Returns (B, 4) = x @ weight.T + bias, matching torch.nn.Linear(4, 4).
    """
    B = x.shape[0]

    # ---- choose packed-row tiling -------------------------------------------
    R = pl.cdiv(B, GROUPS)                          # packed rows needed
    n_blocks = pl.cdiv(R, block_rows)               # grid steps over batch
    # Balanced block size: full array for a single block, else a multiple of 8
    # (sublane rule) close to R / n_blocks so tail padding stays negligible.
    rt = R if n_blocks == 1 else 8 * pl.cdiv(pl.cdiv(R, n_blocks), 8)
    R_pad = rt * n_blocks
    B_pad = R_pad * GROUPS

    if B_pad != B:
        # Only a small tail is padded; feed B as a multiple of 32 (and of
        # rt*32 at very large B) to make this a complete no-op.
        x = jnp.pad(x, ((0, B_pad - B), (0, 0)))

    # Copy-free contiguous view: 32 consecutive batch rows per 128-lane row.
    x_packed = x.reshape(R_pad, LANES)

    # Block-diagonal lift of the 4x4 weight into a proper MXU operand and a
    # tiled bias row.  Both are O(64 KiB), computed once per call, and held
    # VMEM-resident across the whole grid via constant index_maps below.
    w_big = jnp.kron(jnp.eye(GROUPS, dtype=x.dtype), weight.T.astype(x.dtype))
    b_big = jnp.tile(bias.astype(x.dtype), GROUPS).reshape(1, LANES)

    y_packed = pl.pallas_call(
        linear_kernel,
        out_shape=jax.ShapeDtypeStruct((R_pad, LANES), x.dtype),
        grid=(n_blocks,),
        in_specs=[
            pl.BlockSpec((rt, LANES), lambda i: (i, 0)),      # x tile (streamed)
            pl.BlockSpec((LANES, LANES), lambda i: (0, 0)),   # weight (resident)
            pl.BlockSpec((1, LANES), lambda i: (0, 0)),       # bias   (resident)
        ],
        out_specs=pl.BlockSpec((rt, LANES), lambda i: (i, 0)),
        compiler_params=pltpu.CompilerParams(
            dimension_semantics=("parallel",)),               # megacore on v7x
    )(x_packed, w_big, b_big)

    y = y_packed.reshape(B_pad, OUT_FEATURES)
    return y[:B] if B_pad != B else y


if __name__ == "__main__":
    key = jax.random.PRNGKey(0)
    kx, kw, kb = jax.random.split(key, 3)

    # Deterministic parameter init mirroring torch.nn.Linear default:
    # U(-1/sqrt(in_features), 1/sqrt(in_features))
    bound = 1.0 / (IN_FEATURES ** 0.5)
    weight = jax.random.uniform(
        kw, (OUT_FEATURES, IN_FEATURES), minval=-bound, maxval=bound,
        dtype=jnp.float32)
    bias = jax.random.uniform(
        kb, (OUT_FEATURES,), minval=-bound, maxval=bound, dtype=jnp.float32)

    linear = jax.jit(linear_pallas)

    # Primary small-shape check (B = 8).
    B = 8
    x = jax.random.normal(kx, (B, IN_FEATURES), dtype=jnp.float32)
    y = linear(x, weight, bias)
    jax.block_until_ready(y)
    y_ref = x @ weight.T + bias
    assert y.shape == (B, OUT_FEATURES)
    assert jnp.allclose(y, y_ref, atol=1e-5, rtol=1e-5), "mismatch vs reference"

    # Second check exercising the padded (B not a multiple of 32) path.
    B2 = 50
    x2 = jax.random.normal(jax.random.PRNGKey(1), (B2, IN_FEATURES),
                           dtype=jnp.float32)
    y2 = linear(x2, weight, bias)
    jax.block_until_ready(y2)
    y2_ref = x2 @ weight.T + bias
    assert y2.shape == (B2, OUT_FEATURES)
    assert jnp.allclose(y2, y2_ref, atol=1e-5, rtol=1e-5), "mismatch (padded)"

    print("KERNEL_OK")
</pallas_src>

<mosaic_0001>
module attributes {stable_mosaic.version = 11 : i64} {
  func.func @linear_kernel(%arg0: i32, %arg1: memref<1x128xf32, #tpu.memory_space<vmem>>, %arg2: memref<128x128xf32, #tpu.memory_space<vmem>>, %arg3: memref<1x128xf32, #tpu.memory_space<vmem>>, %arg4: memref<1x128xf32, #tpu.memory_space<vmem>>) attributes {dimension_semantics = [#tpu.dimension_semantics<parallel>], iteration_bounds = array<i64: 1>, scalar_prefetch = 0 : i64, scratch_operands = 0 : i64, tpu.core_type = #tpu.core_type<tc>, window_params = [{transform_indices = @transform_0, window_bounds = array<i64: 1, 128>}, {pipeline_mode = #tpu.pipeline_mode<synchronous>, transform_indices = @transform_1, window_bounds = array<i64: 128, 128>}, {pipeline_mode = #tpu.pipeline_mode<synchronous>, transform_indices = @transform_2, window_bounds = array<i64: 1, 128>}, {transform_indices = @transform_3, window_bounds = array<i64: 1, 128>}]} {
    %c0 = arith.constant 0 : index
    %c0_0 = arith.constant 0 : index
    %0 = vector.load %arg1[%c0, %c0_0] : memref<1x128xf32, #tpu.memory_space<vmem>>, vector<1x128xf32>
    %c0_1 = arith.constant 0 : index
    %c0_2 = arith.constant 0 : index
    %1 = vector.load %arg2[%c0_1, %c0_2] : memref<128x128xf32, #tpu.memory_space<vmem>>, vector<128x128xf32>
    %cst = arith.constant dense<0.000000e+00> : vector<1x128xf32>
    %2 = tpu.matmul %0, %1, %cst {dimension_numbers = #tpu.dot_dimension_numbers<[1], [0], [0], [1], [0, 0, 1, 1], [], []>} : vector<1x128xf32>, vector<128x128xf32>, vector<1x128xf32> -> vector<1x128xf32>
    %c0_3 = arith.constant 0 : index
    %c0_4 = arith.constant 0 : index
    %3 = vector.load %arg3[%c0_3, %c0_4] : memref<1x128xf32, #tpu.memory_space<vmem>>, vector<1x128xf32>
    %4 = arith.addf %2, %3 : vector<1x128xf32>
    %c0_5 = arith.constant 0 : index
    %c0_6 = arith.constant 0 : index
    %5 = vector.load %arg4[%c0_5, %c0_6] : memref<1x128xf32, #tpu.memory_space<vmem>>, vector<1x128xf32>
    tpu.vector_store %arg4[%c0_5, %c0_6], %4 {strides = array<i32>} : memref<1x128xf32, #tpu.memory_space<vmem>>, vector<1x128xf32>,
    return
  }
  func.func @transform_0(%arg0: i32) -> (i32, i32) {
    %c0_i32 = arith.constant 0 : i32
    %c0_i32_0 = arith.constant 0 : i32
    return %arg0, %c0_i32 : i32, i32
  }
  func.func @transform_1(%arg0: i32) -> (i32, i32) {
    %c0_i32 = arith.constant 0 : i32
    %c0_i32_0 = arith.constant 0 : i32
    %c0_i32_1 = arith.constant 0 : i32
    return %c0_i32, %c0_i32_0 : i32, i32
  }
  func.func @transform_2(%arg0: i32) -> (i32, i32) {
    %c0_i32 = arith.constant 0 : i32
    %c0_i32_0 = arith.constant 0 : i32
    %c0_i32_1 = arith.constant 0 : i32
    return %c0_i32, %c0_i32_0 : i32, i32
  }
  func.func @transform_3(%arg0: i32) -> (i32, i32) {
    %c0_i32 = arith.constant 0 : i32
    %c0_i32_0 = arith.constant 0 : i32
    return %arg0, %c0_i32 : i32, i32
  }
}

</mosaic_0001>

<bundles_post_ra>
// kernel: tile.8
= control target key start
LH: loop header
LB: loop body
LE: loop exit
PB: predicated region body
PF: predicated region fallthrough
CT: control target
= control target key end

     0   :  { %s40_s0 = inlined_call_operand.vmem [shape: f32[4], index: 0, kind: input, shape index: {}]   ;;  %s41_s1 = inlined_call_operand.vmem [shape: f32[32,4], index: 1, kind: output, shape index: {}]  }
   0x1   :  { %v4_v0 = vld [vmem:[%s40_s0] ss:$0 sm:$0xff] }
   0x2   :  { %5 = vst [vmem:[%s41_s1] sm:$0xff] %v4_v0 }
   0x3   :  { %12 = vst [vmem:[%s41_s1 + $0x8] sm:$0xff] %v4_v0 }
   0x4   :  { %13 = vst [vmem:[%s41_s1 + $0x10] sm:$0xff] %v4_v0 }
   0x5   :  { %14 = vst [vmem:[%s41_s1 + $0x18] sm:$0xff] %v4_v0 }

// kernel: linear_pallas.1
= control target key start
LH: loop header
LB: loop body
LE: loop exit
PB: predicated region body
PF: predicated region fallthrough
CT: control target
= control target key end

     0   :  { %s134_s1 = inlined_call_operand.vmem [shape: f32[128,128], index: 1, kind: input, shape index: {}]   ;;  %s135_s0 = inlined_call_operand.vmem [shape: f32[1,128], index: 0, kind: input, shape index: {}]   ;;  %s136_s2 = inlined_call_operand.vmem [shape: f32[1,128], index: 2, kind: input, shape index: {}]   ;;  %s137_s3 = inlined_call_operand.vmem [shape: f32[1,128], index: 3, kind: output, shape index: {}]  }
   0x1   :  { %v30_v0 = vld [vmem:[%s134_s1 + $0x78] sm:$0xff]  ;;  %v29_v1 = vld [vmem:[%s134_s1 + $0x70] sm:$0xff]  ;;  %v28_v2 = vld [vmem:[%s134_s1 + $0x68] sm:$0xff] }
   0x2   :  { %32 = vmatpush.msra.mxu0 %v30_v0  ;;  %v27_v3 = vld [vmem:[%s134_s1 + $0x60] sm:$0xff]  ;;  %v26_v4 = vld [vmem:[%s134_s1 + $0x58] sm:$0xff]  ;;  %v25_v5 = vld [vmem:[%s134_s1 + $0x50] sm:$0xff] }
   0x3   :  { %v24_v6 = vld [vmem:[%s134_s1 + $0x48] sm:$0xff]  ;;  %v23_v7 = vld [vmem:[%s134_s1 + $0x40] sm:$0xff]  ;;  %v22_v8 = vld [vmem:[%s134_s1 + $0x38] sm:$0xff] }
   0x4   :  { %33 = vmatpush.msra.mxu0 %v29_v1  ;;  %v21_v9 = vld [vmem:[%s134_s1 + $0x30] sm:$0xff]  ;;  %v20_v10 = vld [vmem:[%s134_s1 + $0x28] sm:$0xff]  ;;  %v19_v11 = vld [vmem:[%s134_s1 + $0x20] sm:$0xff] }
   0x5   :  { %v18_v12 = vld [vmem:[%s134_s1 + $0x18] sm:$0xff]  ;;  %v17_v13 = vld [vmem:[%s134_s1 + $0x10] sm:$0xff]  ;;  %v16_v14 = vld [vmem:[%s134_s1 + $0x8] sm:$0xff] }
   0x6   :  { %34 = vmatpush.msra.mxu0 %v28_v2  ;;  %v15_v15 = vld [vmem:[%s134_s1] sm:$0xff] }
   0x7   :  { %v14_v16 = vld [vmem:[%s135_s0] sm:$0x1] }
   0x8   :  { %35 = vmatpush.msra.mxu0 %v27_v3  ;;  %v31_v17 = vld [vmem:[%s136_s2] sm:$0x1] }
   0xa   :  { %36 = vmatpush.msra.mxu0 %v26_v4 }
   0xc   :  { %37 = vmatpush.msra.mxu0 %v25_v5 }
   0xe   :  { %38 = vmatpush.msra.mxu0 %v24_v6 }
  0x10   :  { %39 = vmatpush.msra.mxu0 %v23_v7 }
  0x12   :  { %40 = vmatpush.msra.mxu0 %v22_v8 }
  0x14   :  { %41 = vmatpush.msra.mxu0 %v21_v9 }
  0x16   :  { %42 = vmatpush.msra.mxu0 %v20_v10 }
  0x18   :  { %43 = vmatpush.msra.mxu0 %v19_v11 }
  0x1a   :  { %44 = vmatpush.msra.mxu0 %v18_v12 }
  0x1c   :  { %45 = vmatpush.msra.mxu0 %v17_v13 }
  0x1e   :  { %46 = vmatpush.msra.mxu0 %v16_v14 }
  0x20   :  { %47 = vmatpush.msra.mxu0 %v15_v15 }
  0x21   :  { %48 = vmatmul.f32.vlgmr.msra.gmra.mxu0 %v14_v16 }
  0x9e   :  { %v49_v18 = vpop.f32.mrf.mxu0 }
  0x9f   :  { %v50_v19 = vadd.f32 %v49_v18, %v31_v17 }
  0xa1   :  { %52 = vst [vmem:[%s137_s3] sm:$0x1] %v50_v19 }

</bundles_post_ra>
